<compile_context>
chip_gen: v6e
topology: v6e:2x2x1
jax: 0.10.0
libtpu: 0.0.40
codegen_flags: <defaults>
</compile_context>

<pallas_src>
import functools
import math

import jax
import jax.numpy as jnp
from jax.experimental import pallas as pl
from jax.experimental.pallas import tpu as pltpu


# ----------------------------------------------------------------------------
# Small helpers shared by the kernel path and the pure-JAX reference.
# ----------------------------------------------------------------------------
def _gelu_tanh(x):
    # torch.nn.functional.gelu(x, approximate="tanh")
    c = 0.7978845608028654  # sqrt(2/pi)
    x2 = x * x              # keep the polynomial cheap on the VPU (v5e note)
    return 0.5 * x * (1.0 + jnp.tanh(c * x * (1.0 + 0.044715 * x2)))


def apply_rope(x, cos, sin):
    hs = x.shape[-1]
    x1 = x[..., : hs // 2]
    x2 = x[..., hs // 2:]
    rotated = jnp.concatenate([-x2, x1], axis=-1)
    return (x * cos + rotated * sin).astype(x.dtype)


def build_rope_cache(T, n_elem, base=10000.0):
    theta = 1.0 / (base ** (jnp.arange(0, n_elem, 2, dtype=jnp.float32) / n_elem))
    idx_theta = jnp.outer(jnp.arange(T, dtype=jnp.float32), theta)
    idx_theta = jnp.concatenate([idx_theta, idx_theta], axis=-1)
    return jnp.cos(idx_theta), jnp.sin(idx_theta)


def _row_tile(m, preferred=256):
    # Multiple-of-256 row tiles keep the 2x256^2 MXU (v6e/v7x) fully fed and
    # amortize the ~0.35us per-grid-step overhead; tiny problems use one block.
    return preferred if m >= preferred else m


# ----------------------------------------------------------------------------
# Optional single-buffering (pipeline_mode=pl.Buffered(1)) for grid-constant
# weight/bias blocks: halves their resident VMEM (matters most on v7x, 64 MiB).
# Probed once at runtime and disabled if this JAX build rejects it.
# ----------------------------------------------------------------------------
_CONST_PIPELINE_KW = {}


def _const_spec(block_shape, index_map):
    """BlockSpec for a block whose index_map is constant over the grid."""
    return pl.BlockSpec(block_shape, index_map, **_CONST_PIPELINE_KW)


def _probe_single_buffering():
    def _kern(a_ref, c_ref, o_ref):
        o_ref[...] = a_ref[...] + c_ref[...]

    try:
        a = jnp.ones((16, 128), jnp.float32)
        c = jnp.ones((8, 128), jnp.float32)
        out = pl.pallas_call(
            _kern,
            out_shape=jax.ShapeDtypeStruct((16, 128), jnp.float32),
            grid=(2,),
            in_specs=[
                pl.BlockSpec((8, 128), lambda i: (i, 0)),
                pl.BlockSpec((8, 128), lambda i: (0, 0),
                             pipeline_mode=pl.Buffered(1)),
            ],
            out_specs=pl.BlockSpec((8, 128), lambda i: (i, 0)),
        )(a, c)
        out = jax.block_until_ready(out)
        return bool(jnp.all(out == 2.0))
    except Exception:  # any construction/lowering failure -> fall back
        return False


# ----------------------------------------------------------------------------
# RMSNorm kernel
# ----------------------------------------------------------------------------
def _rmsnorm_kernel(x_ref, w_ref, o_ref, *, eps):
    x = x_ref[...].astype(jnp.float32)
    ms = jnp.mean(x * x, axis=-1, keepdims=True)
    xn = x * jax.lax.rsqrt(ms + eps)
    o_ref[...] = (xn * w_ref[...]).astype(o_ref.dtype)


def rmsnorm(x2d, weight, *, eps=1e-6):
    M, E = x2d.shape
    tm = _row_tile(M)
    w2 = weight.reshape(1, E).astype(jnp.float32)
    return pl.pallas_call(
        functools.partial(_rmsnorm_kernel, eps=eps),
        out_shape=jax.ShapeDtypeStruct((M, E), x2d.dtype),
        grid=(pl.cdiv(M, tm),),
        in_specs=[
            pl.BlockSpec((tm, E), lambda i: (i, 0)),
            _const_spec((1, E), lambda i: (0, 0)),
        ],
        out_specs=pl.BlockSpec((tm, E), lambda i: (i, 0)),
        compiler_params=pltpu.CompilerParams(dimension_semantics=("parallel",)),
    )(x2d, w2)


# ----------------------------------------------------------------------------
# Linear kernel: x @ W + b   (W pre-transposed to [in, out], bf16; bias f32)
# ----------------------------------------------------------------------------
def _linear_kernel(x_ref, w_ref, b_ref, o_ref):
    y = jnp.dot(x_ref[...].astype(w_ref.dtype), w_ref[...],
                preferred_element_type=jnp.float32)       # bf16 MXU, f32 acc
    o_ref[...] = (y + b_ref[...]).astype(o_ref.dtype)


def linear(x2d, w, b):
    M, K = x2d.shape
    N = w.shape[1]
    tm = _row_tile(M)
    b2 = b.reshape(1, N).astype(jnp.float32)
    return pl.pallas_call(
        _linear_kernel,
        out_shape=jax.ShapeDtypeStruct((M, N), x2d.dtype),
        grid=(pl.cdiv(M, tm),),
        in_specs=[
            pl.BlockSpec((tm, K), lambda i: (i, 0)),
            _const_spec((K, N), lambda i: (0, 0)),   # grid-constant weight
            _const_spec((1, N), lambda i: (0, 0)),   # grid-constant bias
        ],
        out_specs=pl.BlockSpec((tm, N), lambda i: (i, 0)),
        compiler_params=pltpu.CompilerParams(dimension_semantics=("parallel",)),
    )(x2d, w, b2)


# ----------------------------------------------------------------------------
# Causal attention kernel (one (batch, head) per grid step)
# ----------------------------------------------------------------------------
def _attention_kernel(q_ref, k_ref, v_ref, o_ref, *, scale):
    q = q_ref[...].astype(jnp.float32)        # (T, hs)
    k = k_ref[...].astype(jnp.float32)
    v = v_ref[...].astype(jnp.float32)
    s = jnp.dot(q, k.T, preferred_element_type=jnp.float32) * scale   # (T, T)
    T = s.shape[0]
    row = jax.lax.broadcasted_iota(jnp.int32, (T, T), 0)
    col = jax.lax.broadcasted_iota(jnp.int32, (T, T), 1)
    s = jnp.where(col <= row, s, -1e30)       # causal mask
    m = jnp.max(s, axis=-1, keepdims=True)
    p = jnp.exp(s - m)
    denom = jnp.sum(p, axis=-1, keepdims=True)
    p = p * pl.reciprocal(denom, approx=True)  # softmax denom on the EUP
    o_ref[...] = jnp.dot(p, v, preferred_element_type=jnp.float32).astype(o_ref.dtype)


def causal_attention(q, k, v, *, scale):
    B, H, T, hs = q.shape
    qf, kf, vf = (t.reshape(B * H, T, hs) for t in (q, k, v))
    spec = pl.BlockSpec((None, T, hs), lambda h: (h, 0, 0))
    out = pl.pallas_call(
        functools.partial(_attention_kernel, scale=scale),
        out_shape=jax.ShapeDtypeStruct((B * H, T, hs), q.dtype),
        grid=(B * H,),
        in_specs=[spec, spec, spec],
        out_specs=spec,
        compiler_params=pltpu.CompilerParams(dimension_semantics=("parallel",)),
    )(qf, kf, vf)
    return out.reshape(B, H, T, hs)


# ----------------------------------------------------------------------------
# Fused GptNeoxMLP kernel: gelu_tanh(x @ W_fc + b_fc) @ W_proj + b_proj + res
# Grid = (row tiles, intermediate tiles); f32 accumulator in VMEM scratch.
# ----------------------------------------------------------------------------
def _mlp_kernel(x_ref, w1_ref, b1_ref, w2_ref, b2_ref, res_ref, o_ref, acc_ref):
    k = pl.program_id(1)

    @pl.when(k == 0)
    def _init():
        acc_ref[...] = jnp.zeros_like(acc_ref)

    # fc: [tm, E] @ [E, ti] -> [tm, ti]   (bf16 MXU, f32 accumulation)
    h = jnp.dot(x_ref[...].astype(w1_ref.dtype), w1_ref[...],
                preferred_element_type=jnp.float32)
    h = h + b1_ref[...]
    g = _gelu_tanh(h)                                    # f32 GELU (VPU/EUP)
    # proj: [tm, ti] @ [ti, E] accumulated into f32 scratch (single cast of g)
    acc_ref[...] += jnp.dot(g.astype(w2_ref.dtype), w2_ref[...],
                            preferred_element_type=jnp.float32)

    @pl.when(k == pl.num_programs(1) - 1)
    def _finalize():
        y = acc_ref[...] + b2_ref[...] + res_ref[...].astype(jnp.float32)
        o_ref[...] = y.astype(o_ref.dtype)


def gpt_neox_mlp(x2d, w_fc, b_fc, w_proj, b_proj, residual, *, tm=256, ti=512):
    """y = gelu_tanh(x @ W_fc + b_fc) @ W_proj + b_proj + residual."""
    M, E = x2d.shape
    I = w_fc.shape[1]
    tm = _row_tile(M, tm)
    if I % ti != 0:
        ti = I  # reduction tiles must divide I exactly (no OOB accumulation)
    b_fc2 = b_fc.reshape(1, I).astype(jnp.float32)
    b_proj2 = b_proj.reshape(1, E).astype(jnp.float32)

    wbytes = w_fc.dtype.itemsize
    # VMEM budget: double-buffered weight tiles + x/res/out tiles + accumulator
    # + GELU intermediate, with 2x headroom; clamp into [16 MiB, 64 MiB (v7x)].
    est = (2 * 2 * E * ti * wbytes        # W_fc / W_proj tiles, 2 buffers each
           + 3 * 2 * tm * E * 4           # x / residual / out tiles
           + tm * E * 4                   # f32 accumulator
           + tm * ti * 4                  # GELU intermediate
           + 2 * (ti + E) * 4)            # biases
    vmem_limit = int(min(max(2 * est, 16 * 1024 * 1024), 64 * 1024 * 1024))

    cost = pl.CostEstimate(
        flops=4 * M * E * I,                      # two matmuls
        transcendentals=M * I,                    # tanh in the GELU
        bytes_accessed=int(M * E * 4 + 2 * E * I * wbytes
                           + (I + E) * 4 + 2 * M * E * 4),
    )

    return pl.pallas_call(
        _mlp_kernel,
        out_shape=jax.ShapeDtypeStruct((M, E), x2d.dtype),
        grid=(pl.cdiv(M, tm), I // ti),
        in_specs=[
            pl.BlockSpec((tm, E), lambda i, k: (i, 0)),   # x rows (constant in k)
            pl.BlockSpec((E, ti), lambda i, k: (0, k)),   # W_fc column tile
            pl.BlockSpec((1, ti), lambda i, k: (0, k)),   # b_fc tile
            pl.BlockSpec((ti, E), lambda i, k: (k, 0)),   # W_proj row tile
            _const_spec((1, E), lambda i, k: (0, 0)),     # b_proj (grid-constant)
            pl.BlockSpec((tm, E), lambda i, k: (i, 0)),   # fused residual
        ],
        out_specs=pl.BlockSpec((tm, E), lambda i, k: (i, 0)),
        scratch_shapes=[pltpu.VMEM((tm, E), jnp.float32)],
        compiler_params=pltpu.CompilerParams(
            dimension_semantics=("parallel", "arbitrary"),
            vmem_limit_bytes=vmem_limit),
        cost_estimate=cost,
    )(x2d, w_fc, b_fc2, w_proj, b_proj2, residual)


# ----------------------------------------------------------------------------
# Full Block forward (parallel residual, non-shared attention norm)
# ----------------------------------------------------------------------------
def block_forward(x, cos, sin, norm1_w, norm2_w, attn_w, attn_b, proj_w, proj_b,
                  fc_w, fc_b, mlp_proj_w, mlp_proj_b, *,
                  n_head, n_query_groups, head_size, rope_n_elem, eps=1e-6,
                  mlp_tm=256, mlp_ti=512):
    B, T, E = x.shape
    M = B * T
    x2d = x.reshape(M, E)

    # norm_1 -> attention
    n1 = rmsnorm(x2d, norm1_w, eps=eps)
    qkv = linear(n1, attn_w, attn_b)                       # (M, (nh+2*ng)*hs)

    q_per_kv = n_head // n_query_groups
    total_qkv = q_per_kv + 2
    qkv = qkv.reshape(B, T, n_query_groups, total_qkv, head_size)
    qkv = jnp.transpose(qkv, (0, 2, 3, 1, 4))              # (B, ng, total, T, hs)
    q = qkv[:, :, :q_per_kv]
    k = qkv[:, :, q_per_kv:q_per_kv + 1]
    v = qkv[:, :, q_per_kv + 1:]
    if n_query_groups != n_head:                           # GQA: expand K/V heads
        k = jnp.broadcast_to(k, (B, n_query_groups, q_per_kv, T, head_size))
        v = jnp.broadcast_to(v, (B, n_query_groups, q_per_kv, T, head_size))
    q = q.reshape(B, n_head, T, head_size)
    k = k.reshape(B, n_head, T, head_size)
    v = v.reshape(B, n_head, T, head_size)

    q = jnp.concatenate([apply_rope(q[..., :rope_n_elem], cos, sin),
                         q[..., rope_n_elem:]], axis=-1)
    k = jnp.concatenate([apply_rope(k[..., :rope_n_elem], cos, sin),
                         k[..., rope_n_elem:]], axis=-1)

    # TODO(synk): KVCache / input_pos decode path and an externally supplied
    # attention mask are not implemented; this covers the causal prefill path.
    y = causal_attention(q, k, v, scale=1.0 / math.sqrt(head_size))
    y = jnp.transpose(y, (0, 2, 1, 3)).reshape(M, n_head * head_size)
    attn_out = linear(y, proj_w, proj_b)                   # (M, E)

    # parallel residual: mlp(norm_2(x)) + attn_out + x  (residual fused in MLP)
    n2 = rmsnorm(x2d, norm2_w, eps=eps)
    res = attn_out + x2d
    out = gpt_neox_mlp(n2, fc_w, fc_b, mlp_proj_w, mlp_proj_b, res,
                       tm=mlp_tm, ti=mlp_ti)
    return out.reshape(B, T, E)


# ----------------------------------------------------------------------------
# Pure-JAX f32 reference (mirrors the PyTorch module exactly)
# ----------------------------------------------------------------------------
def block_reference(x, cos, sin, norm1_w, norm2_w, attn_w, attn_b, proj_w, proj_b,
                    fc_w, fc_b, mlp_proj_w, mlp_proj_b, *,
                    n_head, n_query_groups, head_size, rope_n_elem, eps=1e-6):
    B, T, E = x.shape

    def _rms(v, w):
        ms = jnp.mean(v * v, axis=-1, keepdims=True)
        return v * jax.lax.rsqrt(ms + eps) * w

    n1 = _rms(x, norm1_w)
    qkv = n1 @ attn_w + attn_b
    q_per_kv = n_head // n_query_groups
    total_qkv = q_per_kv + 2
    qkv = qkv.reshape(B, T, n_query_groups, total_qkv, head_size)
    qkv = jnp.transpose(qkv, (0, 2, 3, 1, 4))
    q = qkv[:, :, :q_per_kv]
    k = qkv[:, :, q_per_kv:q_per_kv + 1]
    v = qkv[:, :, q_per_kv + 1:]
    if n_query_groups != n_head:
        k = jnp.broadcast_to(k, (B, n_query_groups, q_per_kv, T, head_size))
        v = jnp.broadcast_to(v, (B, n_query_groups, q_per_kv, T, head_size))
    q = q.reshape(B, n_head, T, head_size)
    k = k.reshape(B, n_head, T, head_size)
    v = v.reshape(B, n_head, T, head_size)
    q = jnp.concatenate([apply_rope(q[..., :rope_n_elem], cos, sin),
                         q[..., rope_n_elem:]], axis=-1)
    k = jnp.concatenate([apply_rope(k[..., :rope_n_elem], cos, sin),
                         k[..., rope_n_elem:]], axis=-1)

    scale = 1.0 / math.sqrt(head_size)
    s = jnp.einsum("bhqd,bhkd->bhqk", q, k) * scale
    row = jnp.arange(T)[:, None]
    col = jnp.arange(T)[None, :]
    s = jnp.where(col <= row, s, -1e30)
    p = jax.nn.softmax(s, axis=-1)
    y = jnp.einsum("bhqk,bhkd->bhqd", p, v)
    y = jnp.transpose(y, (0, 2, 1, 3)).reshape(B, T, n_head * head_size)
    attn_out = y @ proj_w + proj_b

    n2 = _rms(x, norm2_w)
    h = n2 @ fc_w + fc_b
    g = _gelu_tanh(h)
    mlp_out = g @ mlp_proj_w + mlp_proj_b
    return mlp_out + attn_out + x


if __name__ == "__main__":
    # Small, lane-dense config: n_embd=128, n_head=4, n_query_groups=2 (GQA),
    # head_size=32, intermediate_size=512, rotary_percentage=1.0, RMSNorm,
    # GptNeoxMLP with gelu_approximate="tanh", parallel residual.
    B, T = 2, 16
    n_embd, n_head, n_query_groups, head_size = 128, 4, 2, 32
    intermediate_size = 512
    rope_n_elem = head_size
    eps = 1e-6
    qkv_dim = (n_head + 2 * n_query_groups) * head_size

    key = jax.random.PRNGKey(0)
    ks = jax.random.split(key, 11)
    x = jax.random.normal(ks[0], (B, T, n_embd), dtype=jnp.float32)
    cos, sin = build_rope_cache(T, rope_n_elem)

    # nn.Linear weights are [out, in]; store them pre-transposed as [in, out].
    attn_w = 0.02 * jax.random.normal(ks[1], (n_embd, qkv_dim), jnp.float32)
    attn_b = 0.02 * jax.random.normal(ks[2], (qkv_dim,), jnp.float32)
    proj_w = 0.02 * jax.random.normal(ks[3], (n_head * head_size, n_embd), jnp.float32)
    proj_b = 0.02 * jax.random.normal(ks[4], (n_embd,), jnp.float32)
    fc_w = 0.02 * jax.random.normal(ks[5], (n_embd, intermediate_size), jnp.float32)
    fc_b = 0.02 * jax.random.normal(ks[6], (intermediate_size,), jnp.float32)
    mlp_proj_w = 0.02 * jax.random.normal(ks[7], (intermediate_size, n_embd), jnp.float32)
    mlp_proj_b = 0.02 * jax.random.normal(ks[8], (n_embd,), jnp.float32)
    norm1_w = 1.0 + 0.1 * jax.random.normal(ks[9], (n_embd,), jnp.float32)
    norm2_w = 1.0 + 0.1 * jax.random.normal(ks[10], (n_embd,), jnp.float32)

    # Enable single-buffering of grid-constant weight blocks if supported.
    if _probe_single_buffering():
        _CONST_PIPELINE_KW["pipeline_mode"] = pl.Buffered(1)

    common = dict(n_head=n_head, n_query_groups=n_query_groups,
                  head_size=head_size, rope_n_elem=rope_n_elem, eps=eps)

    # Kernel path: bf16 weights for all MXU matmuls, f32 everything else.
    y = block_forward(
        x, cos, sin, norm1_w, norm2_w,
        attn_w.astype(jnp.bfloat16), attn_b,
        proj_w.astype(jnp.bfloat16), proj_b,
        fc_w.astype(jnp.bfloat16), fc_b,
        mlp_proj_w.astype(jnp.bfloat16), mlp_proj_b,
        mlp_tm=256, mlp_ti=256, **common)
    y = jax.block_until_ready(y)

    y_ref = block_reference(x, cos, sin, norm1_w, norm2_w, attn_w, attn_b,
                            proj_w, proj_b, fc_w, fc_b, mlp_proj_w, mlp_proj_b,
                            **common)

    assert y.shape == (B, T, n_embd)
    err = float(jnp.max(jnp.abs(y - y_ref)))
    assert jnp.allclose(y, y_ref, atol=2e-2, rtol=2e-2), \
        f"mismatch vs reference (max abs err {err})"
    print("KERNEL_OK")
</pallas_src>

<mosaic_0001>
module attributes {stable_mosaic.version = 11 : i64} {
  func.func @_kern(%arg0: i32, %arg1: memref<8x128xf32, #tpu.memory_space<vmem>>, %arg2: memref<8x128xf32, #tpu.memory_space<vmem>>, %arg3: memref<8x128xf32, #tpu.memory_space<vmem>>) attributes {dimension_semantics = [#tpu.dimension_semantics<arbitrary>], iteration_bounds = array<i64: 2>, scalar_prefetch = 0 : i64, scratch_operands = 0 : i64, tpu.core_type = #tpu.core_type<tc>, window_params = [{transform_indices = @transform_0, window_bounds = array<i64: 8, 128>}, {pipeline_mode = #tpu.pipeline_mode<synchronous>, transform_indices = @transform_1, window_bounds = array<i64: 8, 128>}, {transform_indices = @transform_2, window_bounds = array<i64: 8, 128>}]} {
    %c0 = arith.constant 0 : index
    %c0_0 = arith.constant 0 : index
    %0 = vector.load %arg1[%c0, %c0_0] : memref<8x128xf32, #tpu.memory_space<vmem>>, vector<8x128xf32>
    %c0_1 = arith.constant 0 : index
    %c0_2 = arith.constant 0 : index
    %1 = vector.load %arg2[%c0_1, %c0_2] : memref<8x128xf32, #tpu.memory_space<vmem>>, vector<8x128xf32>
    %2 = arith.addf %0, %1 : vector<8x128xf32>
    %c0_3 = arith.constant 0 : index
    %c0_4 = arith.constant 0 : index
    %3 = vector.load %arg3[%c0_3, %c0_4] : memref<8x128xf32, #tpu.memory_space<vmem>>, vector<8x128xf32>
    tpu.vector_store %arg3[%c0_3, %c0_4], %2 {strides = array<i32>} : memref<8x128xf32, #tpu.memory_space<vmem>>, vector<8x128xf32>,
    return
  }
  func.func @transform_0(%arg0: i32) -> (i32, i32) {
    %c0_i32 = arith.constant 0 : i32
    %c0_i32_0 = arith.constant 0 : i32
    return %arg0, %c0_i32 : i32, i32
  }
  func.func @transform_1(%arg0: i32) -> (i32, i32) {
    %c0_i32 = arith.constant 0 : i32
    %c0_i32_0 = arith.constant 0 : i32
    %c0_i32_1 = arith.constant 0 : i32
    return %c0_i32, %c0_i32_0 : i32, i32
  }
  func.func @transform_2(%arg0: i32) -> (i32, i32) {
    %c0_i32 = arith.constant 0 : i32
    %c0_i32_0 = arith.constant 0 : i32
    return %arg0, %c0_i32 : i32, i32
  }
}

module attributes {stable_mosaic.version = 11 : i64} {
  func.func @_rmsnorm_kernel(%arg0: i32, %arg1: memref<32x128xf32, #tpu.memory_space<vmem>>, %arg2: memref<1x128xf32, #tpu.memory_space<vmem>>, %arg3: memref<32x128xf32, #tpu.memory_space<vmem>>) attributes {dimension_semantics = [#tpu.dimension_semantics<parallel>], iteration_bounds = array<i64: 1>, scalar_prefetch = 0 : i64, scratch_operands = 0 : i64, tpu.core_type = #tpu.core_type<tc>, window_params = [{transform_indices = @transform_0, window_bounds = array<i64: 32, 128>}, {pipeline_mode = #tpu.pipeline_mode<synchronous>, transform_indices = @transform_1, window_bounds = array<i64: 1, 128>}, {transform_indices = @transform_2, window_bounds = array<i64: 32, 128>}]} {
    %c0 = arith.constant 0 : index
    %c0_0 = arith.constant 0 : index
    %0 = vector.load %arg1[%c0, %c0_0] : memref<32x128xf32, #tpu.memory_space<vmem>>, vector<32x128xf32>
    %1 = arith.mulf %0, %0 : vector<32x128xf32>
    %cst = arith.constant dense<0.000000e+00> : vector<32xf32>
    %2 = vector.multi_reduction <add>, %1, %cst [1] : vector<32x128xf32> to vector<32xf32>
    %3 = vector.shape_cast %2 : vector<32xf32> to vector<32x1xf32>
    %cst_1 = arith.constant 1.280000e+02 : f32
    %4 = vector.broadcast %cst_1 : f32 to vector<32x1xf32>
    %5 = arith.divf %3, %4 : vector<32x1xf32>
    %cst_2 = arith.constant 9.99999997E-7 : f32
    %6 = vector.broadcast %cst_2 : f32 to vector<32x1xf32>
    %7 = arith.addf %5, %6 : vector<32x1xf32>
    %8 = math.rsqrt %7 : vector<32x1xf32>
    %9 = vector.broadcast %8 : vector<32x1xf32> to vector<32x128xf32>
    %10 = arith.mulf %0, %9 : vector<32x128xf32>
    %c0_3 = arith.constant 0 : index
    %c0_4 = arith.constant 0 : index
    %11 = vector.load %arg2[%c0_3, %c0_4] : memref<1x128xf32, #tpu.memory_space<vmem>>, vector<1x128xf32>
    %12 = vector.broadcast %11 : vector<1x128xf32> to vector<32x128xf32>
    %13 = arith.mulf %10, %12 : vector<32x128xf32>
    %c0_5 = arith.constant 0 : index
    %c0_6 = arith.constant 0 : index
    %14 = vector.load %arg3[%c0_5, %c0_6] : memref<32x128xf32, #tpu.memory_space<vmem>>, vector<32x128xf32>
    tpu.vector_store %arg3[%c0_5, %c0_6], %13 {strides = array<i32>} : memref<32x128xf32, #tpu.memory_space<vmem>>, vector<32x128xf32>,
    return
  }
  func.func @transform_0(%arg0: i32) -> (i32, i32) {
    %c0_i32 = arith.constant 0 : i32
    %c0_i32_0 = arith.constant 0 : i32
    return %arg0, %c0_i32 : i32, i32
  }
  func.func @transform_1(%arg0: i32) -> (i32, i32) {
    %c0_i32 = arith.constant 0 : i32
    %c0_i32_0 = arith.constant 0 : i32
    %c0_i32_1 = arith.constant 0 : i32
    return %c0_i32, %c0_i32_0 : i32, i32
  }
  func.func @transform_2(%arg0: i32) -> (i32, i32) {
    %c0_i32 = arith.constant 0 : i32
    %c0_i32_0 = arith.constant 0 : i32
    return %arg0, %c0_i32 : i32, i32
  }
}

</mosaic_0001>

<bundles_post_ra>
// kernel: tpu_custom_call.1
= control target key start
LH: loop header
LB: loop body
LE: loop exit
PB: predicated region body
PF: predicated region fallthrough
CT: control target
= control target key end

     0   :  { %7 = vsyncpa [#allocation3], 0  ;;  %s649_s0 = inlined_call_operand.hbm [shape: f32[16,128], index: 0, kind: input, shape index: {}]   ;;  %s650_s1 = inlined_call_operand.hbm [shape: f32[8,128], index: 1, kind: input, shape index: {}]   ;;  %s651_s2 = inlined_call_operand.hbm [shape: f32[16,128], index: 2, kind: output, shape index: {}]  }
   0x1   :  { %9 = vsyncpa [#allocation3 + $0x1], 0 }
   0x2   :  { %10 = vsyncpa [#allocation6], 0 }
   0x3   :  { %11 = vsyncpa [#allocation4], 0 }
   0x4   :  { %13 = vsyncpa [#allocation4 + $0x1], 0  ;;  %s483_s9 = smov 0   ;;  %s485_s10 = smov 0  }
   0x5   :  { %s487_s11 = smov 0   ;;  %s489_s12 = smov 0  }
   0x6 LB: > { %s504_s13 = sadd.s32 4294967295, %s463_s12   ;;  %s270_s14 = sadd.s32 4294967294, %s463_s12   ;;  %s463_s12 = sphi %s489_s12, %s674_s12   ;;  %s459_s11 = sphi %s487_s11, %s673_s11   ;;  %s455_s10 = sphi %s485_s10, %s672_s10   ;;  %s451_s9 = sphi %s483_s9, %s671_s9  }
   0x7   : > { %p39_p0 = scmp.ne.s32.totalorder %s455_s10, %s451_s9  ;;  %p652_p1 = scmp.eq.s32.totalorder %s504_s13, 0 }
   0x8   : > { %p90_p3 = scmp.eq.s32.totalorder %s270_s14, 1  ;;  %p271_p5 = scmp.ge.s32.totalorder %s463_s12, 1 }
   0x9   : > { %p513_p4 = por %p652_p1, %p39_p0  ;;  %p97_p7 = scmp.lt.s32.totalorder %s463_s12, 3 }
   0xa   : > { %p518_p6 = por %p90_p3, %p39_p0  ;;  %s465_s18 = smov [#allocation5]  }
   0xb   : > { %s656_s15 = scalar_select %p513_p4, 1, 0 }
   0xc   : > { %s657_s16 = scalar_select %p518_p6, 1, 0 }
   0xd   : > { %p523_p8 = pnand %p271_p5, %p97_p7  ;;  %s110_s19 = sshll.u32 %s465_s18, 4  ;;  %s111_s19 = int_to_ptr.vmem [resolvable:$true] %s110_s19 }
   0xe   : > { %s531_s20 = sadd.s32 1, %s463_s12   ;;  %s26_s24 = sadd.s32 1, %s459_s11 }
   0xf   : > { %s658_s17 = scalar_select %p523_p8, 1, 0 }
  0x10   : > { %p292_p10 = pneg %p523_p8  ;;  %s23_s22 = ssub.s32 %s463_s12, %s531_s20 }
  0x11   : > { %p541_p12 = scmp.eq.s32.totalorder %s23_s22, 0  ;;  %p33_p13 = scmp.ne.s32.totalorder %s459_s11, %s455_s10 }
  0x12   : > { %p535_p11 = pnand %p292_p10, %p652_p1  ;;  %s352_s25 = scalar_lea.vmem %s111_s19, 128 }
  0x13   : > { %p353_p3 = scmp.ne.s32.totalorder %s111_s19, %s352_s25  ;;  %p360_p9 = scmp.lt.s32.totalorder %s111_s19, %s111_s19 }
  0x14   : > { %p343_p0 = pneg %p535_p11  ;;  %p361_p2 = scmp.lt.s32.totalorder %s352_s25, %s352_s25 }
  0x16   : > { %p355_p5 = pnand %p353_p3, %p343_p0  ;;  %p362_p10 = por %p361_p2, %p360_p9 }
  0x18   : > { %p356_p7 = pneg %p355_p5 }
  0x1a   : > { %p363_p1 = pnand %p362_p10, %p356_p7 }
  0x1c   : > { %366 = shalt.err (!%p363_p1)
}
  0x1d   : > { %295 = dma.hbm_to_vmem [thread:$0]  (!%p535_p11), %s650_s1, 128, %s111_s19, [#allocation6]  }
  0x1e   : > { %s558_s28 = scalar_select %p541_p12, %s459_s11, %s26_s24  }
  0x1f   : > { %p34_p1 = scmp.eq.s32.totalorder %s463_s12, 0  ;;  %p661_p2 = scmp.eq.s32.totalorder %s504_s13, 1 }
  0x20   : > { %p305_p0 = scmp.lt.s32.totalorder %s463_s12, 2  ;;  %s121_s30 = sand.u32 1, %s459_s11  }
  0x21   : > { %p566_p9 = por %p661_p2, %p33_p13  ;;  %p35_p3 = por %p34_p1, %p33_p13 }
  0x22   : > { %s274_s3 = sshll.u32 %s121_s30, 3  ;;  %s275_s4 = sshll.u32 %s463_s12, 7 }
  0x23   : > { %s662_s29 = scalar_select %p566_p9, 1, 0 }
  0x24   : > { %s579_s7 = scalar_lea.hbm %s649_s0, %s275_s4  ;;  %s125_s8 = scalar_lea.vmem [#allocation2], %s274_s3 }
  0x25   : > { %s132_s14 = sshll.u32 %s125_s8, 4  ;;  %p581_p11 = pnand %p305_p0, %p35_p3  ;;  %s133_s14 = int_to_ptr.vmem [resolvable:$true] %s132_s14 }
  0x26   : > { %s122_s19 = scalar_lea.sflag [#allocation3], %s121_s30  ;;  %s367_s21 = scalar_lea.hbm %s579_s7, 128 }
  0x27   : > { %p368_p12 = scmp.ne.s32.totalorder %s579_s7, %s367_s21  ;;  %p369_p13 = pneg %p581_p11 }
  0x28   : > { %s372_s24 = scalar_lea.hbm %s649_s0, 256  ;;  %p373_p10 = scmp.lt.s32.totalorder %s579_s7, %s649_s0 }
  0x29   : > { %p370_p5 = pnand %p369_p13, %p368_p12  ;;  %p374_p1 = scmp.lt.s32.totalorder %s372_s24, %s367_s21 }
  0x2b   : > { %p371_p7 = pneg %p370_p5  ;;  %p375_p2 = por %p374_p1, %p373_p10 }
  0x2d   : > { %p376_p0 = pnand %p375_p2, %p371_p7 }
  0x2f   : > { %379 = shalt.err (!%p376_p0)
}
  0x30   : > { %s380_s27 = scalar_lea.vmem %s133_s14, 128  ;;  %s466_s30 = smov [#allocation2]  }
  0x31   : > { %p381_p3 = scmp.ne.s32.totalorder %s133_s14, %s380_s27  ;;  %s385_s3 = sshll.u32 %s466_s30, 4  ;;  %s386_s3 = int_to_ptr.vmem [resolvable:$false] %s385_s3 }
  0x32   : > { %s387_s4 = scalar_lea.vmem %s386_s3, 256  ;;  %p388_p12 = scmp.lt.s32.totalorder %s133_s14, %s386_s3 }
  0x33   : > { %p383_p6 = pnand %p381_p3, %p369_p13  ;;  %p389_p5 = scmp.lt.s32.totalorder %s387_s4, %s380_s27 }
  0x35   : > { %p384_p9 = pneg %p383_p6  ;;  %p390_p4 = por %p389_p5, %p388_p12 }
  0x37   : > { %p391_p8 = pnand %p390_p4, %p384_p9 }
  0x39   : > { %394 = shalt.err (!%p391_p8)
}
  0x3a   : > { %299 = dma.hbm_to_vmem [thread:$0]  (!%p581_p11), %s579_s7, 128, %s133_s14, %s122_s19  }
  0x3b   : > { %p664_p7 = scmp.ne.s32.totalorder %s658_s17, 0 }
  0x3c   : > { %s602_s5 = sand.u32 (!%p664_p7), 1, %s455_s10   ;;  %p665_p6 = scmp.ne.s32.totalorder (!%p664_p7), %s656_s15, 0 }
  0x3d   : > { %141 = sbr.rel (%p664_p7) target bundleno = 95 (0x5f), region = 28  ;;  %s277_s6 = sshll.u32 (!%p664_p7), %s602_s5, 3 }
  0x3e   : > { %s144_s8 = scalar_lea.sflag (!%p664_p7), [#allocation3], %s602_s5  ;;  %s147_s21 = scalar_lea.vmem (!%p664_p7), [#allocation2], %s277_s6 }
  0x42   : > { %438 = dma.done.wait (%p665_p6), %s144_s8, 128  }
  0x43   : > { %440 = vsyncadd (%p665_p6), %s144_s8, 4294967168  ;;  %p666_p4 = scmp.eq.s32.totalorder %s504_s13, 0 }
  0x45   : > { %442 = dma.done.wait (%p666_p4), [#allocation6], 128   ;;  %p667_p8 = pmov %p666_p4 }
  0x46   : > { %s171_s17 = scalar_lea.vmem [#allocation7], %s277_s6  ;;  %s281_s14 = sshll.u32 %s504_s13, 7  ;;  %v172_v0 = vld [vmem:[%s147_s21] sm:$0xff]  ;;  %v173_v1 = vld [vmem:[#allocation5] sm:$0xff] }
  0x47   : > { %444 = vsyncadd (%p667_p8), [#allocation6], 4294967168  ;;  %s190_s7 = sshll.u32 %s171_s17, 4  ;;  %v174_v2 = vadd.f32 %v173_v1, %v172_v0  ;;  %s188_s15 = scalar_lea.hbm %s651_s2, %s281_s14  ;;  %s191_s7 = int_to_ptr.vmem [resolvable:$true] %s190_s7 }
  0x48   : > { %s177_s22 = scalar_lea.sflag [#allocation4], %s602_s5  ;;  %s395_s23 = scalar_lea.vmem %s191_s7, 128 }
  0x49   : > { %175 = vst [vmem:[%s171_s17] sm:$0xff] %v174_v2  ;;  %p396_p9 = scmp.ne.s32.totalorder %s191_s7, %s395_s23  ;;  %p668_p11 = scmp.ne.s32.totalorder %s662_s29, 0 }
  0x4a   : > { %s467_s24 = smov [#allocation7]  }
  0x4b   : > { %p397_p13 = pnand %p396_p9, %p668_p11  ;;  %s399_s25 = sshll.u32 %s467_s24, 4  ;;  %s400_s25 = int_to_ptr.vmem [resolvable:$false] %s399_s25 }
  0x4c   : > { %s401_s26 = scalar_lea.vmem %s400_s25, 256  ;;  %p402_p1 = scmp.lt.s32.totalorder %s191_s7, %s400_s25 }
  0x4d   : > { %p398_p10 = pneg %p397_p13  ;;  %p403_p2 = scmp.lt.s32.totalorder %s401_s26, %s395_s23 }
  0x4f   : > { %p404_p0 = por %p403_p2, %p402_p1 }
  0x51   : > { %p405_p3 = pnand %p404_p0, %p398_p10 }
  0x53   : > { %408 = shalt.err (!%p405_p3)
}
  0x54   : > { %s409_s13 = scalar_lea.hbm %s188_s15, 128  ;;  %s413_s3 = scalar_lea.hbm %s651_s2, 256 }
  0x55   : > { %p410_p12 = scmp.ne.s32.totalorder %s188_s15, %s409_s13  ;;  %p414_p6 = scmp.lt.s32.totalorder %s188_s15, %s651_s2 }
  0x56   : > { %p415_p4 = scmp.lt.s32.totalorder %s413_s3, %s409_s13 }
  0x57   : > { %p411_p5 = pnand %p410_p12, %p668_p11 }
  0x58   : > { %p416_p8 = por %p415_p4, %p414_p6 }
  0x59   : > { %p412_p7 = pneg %p411_p5 }
  0x5b   : > { %p417_p9 = pnand %p416_p8, %p412_p7 }
  0x5d   : > { %420 = shalt.err (!%p417_p9)
}
  0x5e   : > { %290 = dma.vmem_to_hbm [thread:$0]  (%p668_p11), %s191_s7, 128, %s188_s15, %s177_s22  }
  0x5f PF: > { %s202_s6 = sand.u32 1, %s451_s9   ;;  %p669_p13 = scmp.ne.s32.totalorder %s657_s16, 0 }
  0x60   : > { %p670_p10 = scmp.ge.s32.totalorder %s463_s12, 2  ;;  %s203_s8 = scalar_lea.sflag [#allocation4], %s202_s6 }
  0x62   : > { %p301_p1 = pnand %p670_p10, %p669_p13 }
  0x64   : > { %p302_p2 = pneg %p301_p1 }
  0x66   : > { %446 = dma.done.wait (%p302_p2), %s203_s8, 128  }
  0x67   : > { %448 = vsyncadd (%p302_p2), %s203_s8, 4294967168  ;;  %p16_p0 = scmp.ge.s32.totalorder %s531_s20, 4   ;;  %s671_s9 = smov %s455_s10 }
  0x68   : > { %s672_s10 = smov %s459_s11  ;;  %s673_s11 = smov %s558_s28 }
  0x69   : > { %s674_s12 = smov %s531_s20  ;;  %18 = sbr.rel (!%p16_p0) target bundleno = 6 (0x6), region = 77 }
  0x6e   :  { %208 = vsyncpa [#allocation3], 1 }
  0x6f   :  { %210 = vsyncpa [#allocation3 + $0x1], 1 }
  0x70   :  { %211 = vsyncpa [#allocation6], 1 }
  0x71   :  { %212 = vsyncpa [#allocation4], 1 }
  0x72   :  { %214 = vsyncpa [#allocation4 + $0x1], 1 }

// kernel: tpu_custom_call.1
= control target key start
LH: loop header
LB: loop body
LE: loop exit
PB: predicated region body
PF: predicated region fallthrough
CT: control target
= control target key end

     0   :  { %7 = vsyncpa [#allocation3], 0  ;;  %s182_s0 = inlined_call_operand.hbm [shape: f32[32,128], index: 0, kind: input, shape index: {}]   ;;  %s183_s1 = inlined_call_operand.vmem [shape: f32[1,128], index: 1, kind: input, shape index: {}]   ;;  %s184_s2 = inlined_call_operand.hbm [shape: f32[32,128], index: 2, kind: output, shape index: {}]  }
   0x1   :  { %8 = vsyncpa [#allocation4], 0  ;;  %s148_s9 = smov [#allocation2]  }
   0x2   :  { %s14_s10 = sshll.u32 %s148_s9, 4  ;;  %s15_s10 = int_to_ptr.vmem [resolvable:$true] %s14_s10 }
   0x3   :  { %s112_s11 = scalar_lea.vmem %s15_s10, 512  ;;  %p117_p1 = scmp.lt.s32.totalorder %s15_s10, %s15_s10 }
   0x4   :  { %p113_p0 = scmp.ne.s32.totalorder %s15_s10, %s112_s11  ;;  %p118_p2 = scmp.lt.s32.totalorder %s112_s11, %s112_s11 }
   0x6   :  { %p119_p3 = por %p118_p2, %p117_p1 }
   0x8   :  { %p120_p4 = pnand %p119_p3, %p113_p0 }
   0xa   :  { %123 = shalt.err (!%p120_p4)
}
   0xb   :  { %s149_s12 = smov 128   ;;  %s150_s13 = smov 8  }
   0xc   :  { %20 = dma.hbm_to_vmem [thread:$0]  %s182_s0, 512, %s15_s10, [#allocation3], %s149_s12, %s149_s12, %s150_s13  }
   0xd   :  { %144 = dma.done.wait [#allocation3], 512  }
   0xe   :  { %145 = vsyncadd [#allocation3], 4294966784  ;;  %v28_v0 = vld [vmem:[#allocation2 + $0x10] sm:$0xff]  ;;  %v26_v1 = vld [vmem:[#allocation2] sm:$0xff]  ;;  %s151_s17 = smov [#allocation5]  }
   0xf   :  { %v29_v2 = vld [vmem:[#allocation2 + $0x18] sm:$0xff]  ;;  %v32_v3 = vmul.f32 %v28_v0, %v28_v0  ;;  %v30_v4 = vmul.f32 %v26_v1, %v26_v1  ;;  %v27_v5 = vld [vmem:[#allocation2 + $0x8] sm:$0xff]  ;;  %v91_v21 = vld [vmem:[%s183_s1] ss:$0 sm:$0xff]  ;;  %s79_s18 = sshll.u32 %s151_s17, 4  ;;  %s80_s18 = int_to_ptr.vmem [resolvable:$true] %s79_s18 }
  0x10   :  { %v33_v6 = vmul.f32 %v29_v2, %v29_v2  ;;  %v31_v7 = vmul.f32 %v27_v5, %v27_v5  ;;  %s124_s19 = scalar_lea.vmem %s80_s18, 512  ;;  %p129_p6 = scmp.lt.s32.totalorder %s80_s18, %s80_s18 }
  0x11   :  { %38 = vadd.xlane.f32.xlu1 %v32_v3  ;;  %34 = vadd.xlane.f32.xlu0 %v30_v4  ;;  %p125_p5 = scmp.ne.s32.totalorder %s80_s18, %s124_s19  ;;  %p130_p7 = scmp.lt.s32.totalorder %s124_s19, %s124_s19 }
  0x13   :  { %p131_p8 = por %p130_p7, %p129_p6 }
  0x15   :  { %40 = vadd.xlane.f32.xlu1 %v33_v6  ;;  %36 = vadd.xlane.f32.xlu0 %v31_v7  ;;  %p132_p9 = pnand %p131_p8, %p125_p5 }
  0x9a   :  { %v39_v8 = vpop.xlane.xlu1 %38  ;;  %v35_v9 = vpop.xlane.xlu0 %34 }
  0x9b   :  { %v45_v10 = vmul.f32 0.0078125, %v39_v8  ;;  %v43_v11 = vmul.f32 0.0078125, %v35_v9 }
  0x9d   :  { %v49_v12 = vadd.f32 1e-06, %v45_v10  ;;  %v47_v13 = vadd.f32 1e-06, %v43_v11 }
  0x9e   :  { %v41_v14 = vpop.xlane.xlu1 %40  ;;  %v37_v15 = vpop.xlane.xlu0 %36 }
  0x9f   :  { %96 = vrsqrt.f32 %v49_v12  ;;  %v46_v16 = vmul.f32 0.0078125, %v41_v14  ;;  %v44_v17 = vmul.f32 0.0078125, %v37_v15 }
  0xa0   :  { %98 = vrsqrt.f32 %v47_v13 }
  0xa1   :  { %v50_v18 = vadd.f32 1e-06, %v46_v16  ;;  %v48_v19 = vadd.f32 1e-06, %v44_v17 }
  0xa3   :  { %100 = vrsqrt.f32 %v50_v18 }
  0xa4   :  { %102 = vrsqrt.f32 %v48_v19 }
  0xac   :  { %v97_v20 = vpop.eup %96 }
  0xad   :  { %v99_v22 = vpop.eup %98  ;;  %v57_v23 = vmul.f32 %v97_v20, %v28_v0 }
  0xae   :  { %v55_v24 = vmul.f32 %v99_v22, %v26_v1 }
  0xaf   :  { %v68_v25 = vmul.f32 %v91_v21, %v57_v23 }
  0xb0   :  { %v101_v26 = vpop.eup %100  ;;  %v66_v27 = vmul.f32 %v91_v21, %v55_v24 }
  0xb1   :  { %v103_v28 = vpop.eup %102  ;;  %v58_v29 = vmul.f32 %v101_v26, %v29_v2  ;;  %72 = vst [vmem:[#allocation5 + $0x10] sm:$0xff] %v68_v25 }
  0xb2   :  { %v56_v30 = vmul.f32 %v103_v28, %v27_v5  ;;  %70 = vst [vmem:[#allocation5] sm:$0xff] %v66_v27 }
  0xb3   :  { %v69_v31 = vmul.f32 %v91_v21, %v58_v29 }
  0xb4   :  { %v67_v32 = vmul.f32 %v91_v21, %v56_v30 }
  0xb5   :  { %73 = vst [vmem:[#allocation5 + $0x18] sm:$0xff] %v69_v31 }
  0xb6   :  { %71 = vst [vmem:[#allocation5 + $0x8] sm:$0xff] %v67_v32 }
  0xb7   :  { %135 = shalt.err (!%p132_p9)
}
  0xb8   :  { %85 = dma.vmem_to_hbm [thread:$0]  %s80_s18, 512, %s184_s2, [#allocation4], %s149_s12, %s149_s12, %s150_s13  }
  0xb9   :  { %146 = dma.done.wait [#allocation4], 512  }
  0xba   :  { %147 = vsyncadd [#allocation4], 4294966784 }
  0xbb   :  { %89 = vsyncpa [#allocation3], 1 }
  0xbc   :  { %90 = vsyncpa [#allocation4], 1 }

</bundles_post_ra>
